<compile_context>
chip_gen: v7x
topology: tpu7x:2x2x1
jax: 0.10.0
libtpu: 0.0.40
codegen_flags: <defaults>
</compile_context>

<pallas_src>
import functools

import jax
import jax.numpy as jnp
from jax.experimental import pallas as pl
from jax.experimental.pallas import tpu as pltpu

EPS = 1e-08


def _round_up(x, m):
    return ((x + m - 1) // m) * m


def _cdiv(a, b):
    return (a + b - 1) // b


def _loss_kernel(pred_ref, tgt_ref, pstar_ref, w_ref, out_ref, *,
                 n_rows, k, tile_b, tiles_per_part, eps):
    p = pl.program_id(0)   # partial index ("parallel"; 1 on v5e/v6e, 2 on v7x)
    i = pl.program_id(1)   # row-tile index within this partial ("arbitrary")

    # Output block acts as the accumulator: resident across the ti axis,
    # written back to HBM once per partial.
    @pl.when(i == 0)
    def _init():
        out_ref[...] = jnp.zeros_like(out_ref)

    # pred: (tile_b, K, 128) with pred[b, j, l] = prediction[row, j],
    # row = start + b*128 + l.  Cast to f32 for the multiply/log.
    # (Optionally keep bf16 through the selects on v6e/v7x; f32 is exact.)
    pred = pred_ref[...].astype(jnp.float32)
    tgt = tgt_ref[...]                            # (tile_b, 1, 128) int32
    pstar = pstar_ref[...].astype(jnp.float32)    # (1, K, K): [0, j, c] = p_star[c, j]
    w = w_ref[...].astype(jnp.float32)            # (1, K, 1):  [0, c, 0] = weight[c]

    # Row-validity mask: wrapper 128-padding, partial last tile and phantom
    # tiles (un-clamped index) must contribute exactly zero and never inject
    # NaNs from garbage padded data.
    start = (p * tiles_per_part + i) * (tile_b * 128)     # un-clamped global row offset
    blk = jax.lax.broadcasted_iota(jnp.int32, (tile_b, 1, 128), 0)
    lane = jax.lax.broadcasted_iota(jnp.int32, (tile_b, 1, 128), 2)
    valid = (start + blk * 128 + lane) < n_rows           # (tile_b, 1, 128) bool

    # Exact K-way chained-select gather of p_star[target] (transposed) and
    # weight[target]; pure VPU, one class mask reused for both selects.
    ga = jnp.zeros((tile_b, k, 128), jnp.float32)          # p_star[target].T per row
    wt = jnp.zeros((tile_b, 1, 128), jnp.float32)          # weight[target]
    for c in range(k):
        mc = tgt == c                                      # (tile_b, 1, 128)
        ga = jnp.where(mc, pstar[:, :, c:c + 1], ga)       # bcast (1, K, 1)
        wt = jnp.where(mc, w[:, c:c + 1, :], wt)           # bcast (1, 1, 1)

    # <p_star[target], prediction_row> : reduce over the (small) sublane axis.
    dots = jnp.sum(ga * pred, axis=1, keepdims=True)       # (tile_b, 1, 128)

    # Invalid lanes: select 0 (jnp.where does not propagate NaN/Inf from the
    # unselected branch, so garbage padded prediction data is harmless).
    vals = jnp.where(valid, wt * jnp.log(dots + eps), 0.0)  # (tile_b, 1, 128)

    # Fold the tile into a single lane-dense vreg and accumulate.
    out_ref[...] += jnp.sum(vals, axis=0, keepdims=True)    # (1, 1, 128)


def proposed_loss(prediction, target, weight, p_star, *, eps=EPS,
                  tile_n=8192, num_partials=1):
    """prediction: (N, K) float, target: (N,) int, weight: (K,), p_star: (K, K)."""
    n, k = prediction.shape

    nb_rows = _round_up(n, 128)     # rows padded to a lane multiple
    n_blocks = nb_rows // 128       # number of 128-row lane blocks

    # Lane-blocks (128 rows each) per grid step.  Default 64 blocks = 8192 rows
    # so per-step DMA/compute dwarfs the ~0.35us fixed grid-step overhead;
    # capped so double-buffered prediction+target blocks stay well inside the
    # 32 MiB scoped VMEM budget (safe on v5e/v6e/v7x).
    pred_bytes = jnp.dtype(prediction.dtype).itemsize
    per_block_bytes = 128 * (k * pred_bytes + 4)            # prediction + target, per lane-block
    budget = 12 * 1024 * 1024
    tile_b_cap = max(1, budget // (2 * per_block_bytes))    # 2x for double buffering
    tile_b = int(max(1, min(tile_n // 128, n_blocks, tile_b_cap)))

    tiles_total = _cdiv(n_blocks, tile_b)
    p_parts = max(1, min(int(num_partials), tiles_total))   # 1 on v5e/v6e, 2 on v7x
    tiles_per_part = _cdiv(tiles_total, p_parts)

    # Lane-dense repack (wrapper-side copies are cheap vs. the saved VPU work):
    #   pred3[b, j, l] = prediction[b*128 + l, j],  tgt3[b, 0, l] = target[b*128 + l]
    pad = nb_rows - n
    pred_p = jnp.pad(prediction, ((0, pad), (0, 0)))
    tgt_p = jnp.pad(target.astype(jnp.int32), ((0, pad),))
    pred3 = pred_p.reshape(n_blocks, 128, k).transpose(0, 2, 1)      # (n_blocks, K, 128)
    tgt3 = tgt_p.reshape(n_blocks, 1, 128)                           # (n_blocks, 1, 128)
    pstar3 = jnp.asarray(p_star, jnp.float32).T[None, :, :]          # (1, K, K)
    w3 = jnp.asarray(weight, jnp.float32).reshape(1, k, 1)           # (1, K, 1)

    def row_block(pi, ti):
        # Clamp phantom tiles (uneven split between partials) onto the last
        # real tile; their rows are masked in-kernel via the un-clamped index.
        t = jnp.minimum(pi * tiles_per_part + ti, tiles_total - 1)
        return (t, 0, 0)

    kernel = functools.partial(
        _loss_kernel, n_rows=n, k=k, tile_b=tile_b,
        tiles_per_part=tiles_per_part, eps=float(eps))

    partials = pl.pallas_call(
        kernel,
        out_shape=jax.ShapeDtypeStruct((p_parts, 1, 128), jnp.float32),
        grid_spec=pltpu.PrefetchScalarGridSpec(
            num_scalar_prefetch=0,
            grid=(p_parts, tiles_per_part),
            in_specs=[
                pl.BlockSpec((tile_b, k, 128), row_block),            # prediction (lane-dense)
                pl.BlockSpec((tile_b, 1, 128), row_block),            # target (lane-dense)
                pl.BlockSpec((1, k, k), lambda pi, ti: (0, 0, 0)),    # p_star^T, resident
                pl.BlockSpec((1, k, 1), lambda pi, ti: (0, 0, 0)),    # weight, resident
            ],
            out_specs=pl.BlockSpec((1, 1, 128), lambda pi, ti: (pi, 0, 0)),
        ),
        compiler_params=pltpu.CompilerParams(
            dimension_semantics=("parallel", "arbitrary"),
            vmem_limit_bytes=32 * 1024 * 1024,
        ),
    )(pred3, tgt3, pstar3, w3)

    return -(jnp.sum(partials) / jnp.float32(n))


def _reference_loss(prediction, target, weight, p_star, eps=EPS):
    gathered = p_star[target]                                         # (N, K)
    dots = jnp.sum(gathered * prediction.astype(jnp.float32), axis=-1)
    return -jnp.mean(weight[target] * jnp.log(dots + eps))


if __name__ == "__main__":
    K = 3
    N = 1100  # not a multiple of 128 -> exercises row padding / tail masking

    key = jax.random.PRNGKey(0)
    k1, k2 = jax.random.split(key)

    # deterministic "module parameters" (defaults from __init__)
    weight = jnp.ones((K,), dtype=jnp.float32)
    p_star = jnp.eye(K, dtype=jnp.float32)

    # example inputs: prediction = class-probability rows, target = int labels
    logits = jax.random.normal(k1, (N, K), dtype=jnp.float32)
    prediction = jax.nn.softmax(logits, axis=-1)
    target = jax.random.randint(k2, (N,), 0, K, dtype=jnp.int32)

    # tile_n=256 (2 lane-blocks/step) + num_partials=2 -> grid (2, 3) with one
    # phantom tile and one partial last tile: exercises the pipeline, the
    # resident p_star/weight blocks, the tail mask, the phantom-tile clamp and
    # the partial merge.  Production use: leave tile_n/num_partials defaults.
    loss = proposed_loss(prediction, target, weight, p_star,
                         tile_n=256, num_partials=2)
    loss = jax.block_until_ready(loss)

    ref = _reference_loss(prediction, target, weight, p_star)
    assert jnp.allclose(loss, ref, rtol=1e-5, atol=1e-6), (loss, ref)

    print("KERNEL_OK")
</pallas_src>

<mosaic_0001>
module attributes {stable_mosaic.version = 11 : i64} {
  func.func @_loss_kernel(%arg0: i32, %arg1: i32, %arg2: memref<2x3x128xf32, #tpu.memory_space<vmem>>, %arg3: memref<2x1x128xi32, #tpu.memory_space<vmem>>, %arg4: memref<1x3x3xf32, #tpu.memory_space<vmem>>, %arg5: memref<1x3x1xf32, #tpu.memory_space<vmem>>, %arg6: memref<1x1x128xf32, #tpu.memory_space<vmem>>) attributes {dimension_semantics = [#tpu.dimension_semantics<parallel>, #tpu.dimension_semantics<arbitrary>], iteration_bounds = array<i64: 2, 3>, scalar_prefetch = 0 : i64, scratch_operands = 0 : i64, tpu.core_type = #tpu.core_type<tc>, window_params = [{transform_indices = @transform_0, window_bounds = array<i64: 2, 3, 128>}, {transform_indices = @transform_1, window_bounds = array<i64: 2, 1, 128>}, {pipeline_mode = #tpu.pipeline_mode<synchronous>, transform_indices = @transform_2, window_bounds = array<i64: 1, 3, 3>}, {pipeline_mode = #tpu.pipeline_mode<synchronous>, transform_indices = @transform_3, window_bounds = array<i64: 1, 3, 1>}, {transform_indices = @transform_4, window_bounds = array<i64: 1, 1, 128>}]} {
    %c0_i32 = arith.constant 0 : i32
    %0 = arith.cmpi eq, %arg1, %c0_i32 : i32
    %1 = arith.extui %0 : i1 to i32
    %c0_i32_0 = arith.constant 0 : i32
    %2 = arith.cmpi ne, %1, %c0_i32_0 : i32
    scf.if %2 {
      %cst_24 = arith.constant 0.000000e+00 : f32
      %71 = vector.broadcast %cst_24 : f32 to vector<1x1x128xf32>
      %c0_25 = arith.constant 0 : index
      %c0_26 = arith.constant 0 : index
      %c0_27 = arith.constant 0 : index
      %72 = vector.load %arg6[%c0_25, %c0_26, %c0_27] : memref<1x1x128xf32, #tpu.memory_space<vmem>>, vector<1x1x128xf32>
      tpu.vector_store %arg6[%c0_25, %c0_26, %c0_27], %71 {strides = array<i32>} : memref<1x1x128xf32, #tpu.memory_space<vmem>>, vector<1x1x128xf32>,
    } else {
    }
    %c0 = arith.constant 0 : index
    %c0_1 = arith.constant 0 : index
    %c0_2 = arith.constant 0 : index
    %3 = vector.load %arg2[%c0, %c0_1, %c0_2] : memref<2x3x128xf32, #tpu.memory_space<vmem>>, vector<2x3x128xf32>
    %c0_3 = arith.constant 0 : index
    %c0_4 = arith.constant 0 : index
    %c0_5 = arith.constant 0 : index
    %4 = vector.load %arg3[%c0_3, %c0_4, %c0_5] : memref<2x1x128xi32, #tpu.memory_space<vmem>>, vector<2x1x128xi32>
    %c0_6 = arith.constant 0 : index
    %c0_7 = arith.constant 0 : index
    %c0_8 = arith.constant 0 : index
    %5 = vector.load %arg4[%c0_6, %c0_7, %c0_8] : memref<1x3x3xf32, #tpu.memory_space<vmem>>, vector<1x3x3xf32>
    %c0_9 = arith.constant 0 : index
    %c0_10 = arith.constant 0 : index
    %c0_11 = arith.constant 0 : index
    %6 = vector.load %arg5[%c0_9, %c0_10, %c0_11] : memref<1x3x1xf32, #tpu.memory_space<vmem>>, vector<1x3x1xf32>
    %c3_i32 = arith.constant 3 : i32
    %7 = arith.muli %arg0, %c3_i32 : i32
    %8 = arith.addi %7, %arg1 : i32
    %c256_i32 = arith.constant 256 : i32
    %9 = arith.muli %8, %c256_i32 : i32
    %10 = tpu.iota {dimensions = array<i32: 0>} : vector<2x1x128xi32>
    %11 = tpu.iota {dimensions = array<i32: 2>} : vector<2x1x128xi32>
    %c128_i32 = arith.constant 128 : i32
    %12 = vector.broadcast %c128_i32 : i32 to vector<2x1x128xi32>
    %13 = arith.muli %10, %12 : vector<2x1x128xi32>
    %14 = vector.broadcast %9 : i32 to vector<2x1x128xi32>
    %15 = arith.addi %14, %13 : vector<2x1x128xi32>
    %16 = arith.addi %15, %11 : vector<2x1x128xi32>
    %c1100_i32 = arith.constant 1100 : i32
    %17 = vector.broadcast %c1100_i32 : i32 to vector<2x1x128xi32>
    %18 = arith.cmpi slt, %16, %17 : vector<2x1x128xi32>
    %cst = arith.constant 0.000000e+00 : f32
    %19 = vector.broadcast %cst : f32 to vector<2x3x128xf32>
    %cst_12 = arith.constant 0.000000e+00 : f32
    %20 = vector.broadcast %cst_12 : f32 to vector<2x1x128xf32>
    %c0_i32_13 = arith.constant 0 : i32
    %21 = vector.broadcast %c0_i32_13 : i32 to vector<2x1x128xi32>
    %22 = arith.cmpi eq, %4, %21 : vector<2x1x128xi32>
    %23 = vector.extract_strided_slice %5 {offsets = [0, 0, 0], sizes = [1, 3, 1], strides = [1, 1, 1]} : vector<1x3x3xf32> to vector<1x3x1xf32>
    %24 = vector.shape_cast %22 : vector<2x1x128xi1> to vector<2x1x128xi1>
    %25 = vector.broadcast %24 : vector<2x1x128xi1> to vector<2x3x128xi1>
    %26 = vector.shape_cast %23 : vector<1x3x1xf32> to vector<1x3x1xf32>
    %27 = vector.broadcast %26 : vector<1x3x1xf32> to vector<2x3x128xf32>
    %28 = arith.select %25, %27, %19 : vector<2x3x128xi1>, vector<2x3x128xf32>
    %29 = vector.extract_strided_slice %6 {offsets = [0, 0, 0], sizes = [1, 1, 1], strides = [1, 1, 1]} : vector<1x3x1xf32> to vector<1x1x1xf32>
    %30 = vector.shape_cast %29 : vector<1x1x1xf32> to vector<1x1x1xf32>
    %31 = vector.broadcast %30 : vector<1x1x1xf32> to vector<2x1x128xf32>
    %32 = arith.select %22, %31, %20 : vector<2x1x128xi1>, vector<2x1x128xf32>
    %c1_i32 = arith.constant 1 : i32
    %33 = vector.broadcast %c1_i32 : i32 to vector<2x1x128xi32>
    %34 = arith.cmpi eq, %4, %33 : vector<2x1x128xi32>
    %35 = vector.extract_strided_slice %5 {offsets = [0, 0, 1], sizes = [1, 3, 1], strides = [1, 1, 1]} : vector<1x3x3xf32> to vector<1x3x1xf32>
    %36 = vector.shape_cast %34 : vector<2x1x128xi1> to vector<2x1x128xi1>
    %37 = vector.broadcast %36 : vector<2x1x128xi1> to vector<2x3x128xi1>
    %38 = vector.shape_cast %35 : vector<1x3x1xf32> to vector<1x3x1xf32>
    %39 = vector.broadcast %38 : vector<1x3x1xf32> to vector<2x3x128xf32>
    %40 = arith.select %37, %39, %28 : vector<2x3x128xi1>, vector<2x3x128xf32>
    %41 = vector.extract_strided_slice %6 {offsets = [0, 1, 0], sizes = [1, 1, 1], strides = [1, 1, 1]} : vector<1x3x1xf32> to vector<1x1x1xf32>
    %42 = vector.shape_cast %41 : vector<1x1x1xf32> to vector<1x1x1xf32>
    %43 = vector.broadcast %42 : vector<1x1x1xf32> to vector<2x1x128xf32>
    %44 = arith.select %34, %43, %32 : vector<2x1x128xi1>, vector<2x1x128xf32>
    %c2_i32 = arith.constant 2 : i32
    %45 = vector.broadcast %c2_i32 : i32 to vector<2x1x128xi32>
    %46 = arith.cmpi eq, %4, %45 : vector<2x1x128xi32>
    %47 = vector.extract_strided_slice %5 {offsets = [0, 0, 2], sizes = [1, 3, 1], strides = [1, 1, 1]} : vector<1x3x3xf32> to vector<1x3x1xf32>
    %48 = vector.shape_cast %46 : vector<2x1x128xi1> to vector<2x1x128xi1>
    %49 = vector.broadcast %48 : vector<2x1x128xi1> to vector<2x3x128xi1>
    %50 = vector.shape_cast %47 : vector<1x3x1xf32> to vector<1x3x1xf32>
    %51 = vector.broadcast %50 : vector<1x3x1xf32> to vector<2x3x128xf32>
    %52 = arith.select %49, %51, %40 : vector<2x3x128xi1>, vector<2x3x128xf32>
    %53 = vector.extract_strided_slice %6 {offsets = [0, 2, 0], sizes = [1, 1, 1], strides = [1, 1, 1]} : vector<1x3x1xf32> to vector<1x1x1xf32>
    %54 = vector.shape_cast %53 : vector<1x1x1xf32> to vector<1x1x1xf32>
    %55 = vector.broadcast %54 : vector<1x1x1xf32> to vector<2x1x128xf32>
    %56 = arith.select %46, %55, %44 : vector<2x1x128xi1>, vector<2x1x128xf32>
    %57 = arith.mulf %52, %3 : vector<2x3x128xf32>
    %cst_14 = arith.constant dense<0.000000e+00> : vector<2x128xf32>
    %58 = vector.multi_reduction <add>, %57, %cst_14 [1] : vector<2x3x128xf32> to vector<2x128xf32>
    %59 = vector.shape_cast %58 : vector<2x128xf32> to vector<2x1x128xf32>
    %cst_15 = arith.constant 9.99999993E-9 : f32
    %60 = vector.broadcast %cst_15 : f32 to vector<2x1x128xf32>
    %61 = arith.addf %59, %60 : vector<2x1x128xf32>
    %62 = math.log %61 : vector<2x1x128xf32>
    %63 = arith.mulf %56, %62 : vector<2x1x128xf32>
    %cst_16 = arith.constant 0.000000e+00 : f32
    %64 = vector.broadcast %cst_16 : f32 to vector<2x1x128xf32>
    %65 = arith.select %18, %63, %64 : vector<2x1x128xi1>, vector<2x1x128xf32>
    %c0_17 = arith.constant 0 : index
    %c0_18 = arith.constant 0 : index
    %c0_19 = arith.constant 0 : index
    %66 = vector.load %arg6[%c0_17, %c0_18, %c0_19] : memref<1x1x128xf32, #tpu.memory_space<vmem>>, vector<1x1x128xf32>
    %cst_20 = arith.constant dense<0.000000e+00> : vector<1x128xf32>
    %67 = vector.multi_reduction <add>, %65, %cst_20 [0] : vector<2x1x128xf32> to vector<1x128xf32>
    %68 = vector.shape_cast %67 : vector<1x128xf32> to vector<1x1x128xf32>
    %69 = arith.addf %66, %68 : vector<1x1x128xf32>
    %c0_21 = arith.constant 0 : index
    %c0_22 = arith.constant 0 : index
    %c0_23 = arith.constant 0 : index
    %70 = vector.load %arg6[%c0_21, %c0_22, %c0_23] : memref<1x1x128xf32, #tpu.memory_space<vmem>>, vector<1x1x128xf32>
    tpu.vector_store %arg6[%c0_21, %c0_22, %c0_23], %69 {strides = array<i32>} : memref<1x1x128xf32, #tpu.memory_space<vmem>>, vector<1x1x128xf32>,
    return
  }
  func.func @transform_0(%arg0: i32, %arg1: i32) -> (i32, i32, i32) {
    %c3_i32 = arith.constant 3 : i32
    %0 = arith.muli %arg0, %c3_i32 : i32
    %1 = arith.addi %0, %arg1 : i32
    %c4_i32 = arith.constant 4 : i32
    %2 = arith.minsi %1, %c4_i32 : i32
    %c0_i32 = arith.constant 0 : i32
    %c0_i32_0 = arith.constant 0 : i32
    %c0_i32_1 = arith.constant 0 : i32
    return %2, %c0_i32, %c0_i32_0 : i32, i32, i32
  }
  func.func @transform_1(%arg0: i32, %arg1: i32) -> (i32, i32, i32) {
    %c3_i32 = arith.constant 3 : i32
    %0 = arith.muli %arg0, %c3_i32 : i32
    %1 = arith.addi %0, %arg1 : i32
    %c4_i32 = arith.constant 4 : i32
    %2 = arith.minsi %1, %c4_i32 : i32
    %c0_i32 = arith.constant 0 : i32
    %c0_i32_0 = arith.constant 0 : i32
    %c0_i32_1 = arith.constant 0 : i32
    return %2, %c0_i32, %c0_i32_0 : i32, i32, i32
  }
  func.func @transform_2(%arg0: i32, %arg1: i32) -> (i32, i32, i32) {
    %c0_i32 = arith.constant 0 : i32
    %c0_i32_0 = arith.constant 0 : i32
    %c0_i32_1 = arith.constant 0 : i32
    %c0_i32_2 = arith.constant 0 : i32
    return %c0_i32, %c0_i32_0, %c0_i32_1 : i32, i32, i32
  }
  func.func @transform_3(%arg0: i32, %arg1: i32) -> (i32, i32, i32) {
    %c0_i32 = arith.constant 0 : i32
    %c0_i32_0 = arith.constant 0 : i32
    %c0_i32_1 = arith.constant 0 : i32
    %c0_i32_2 = arith.constant 0 : i32
    return %c0_i32, %c0_i32_0, %c0_i32_1 : i32, i32, i32
  }
  func.func @transform_4(%arg0: i32, %arg1: i32) -> (i32, i32, i32) {
    %c0_i32 = arith.constant 0 : i32
    %c0_i32_0 = arith.constant 0 : i32
    %c0_i32_1 = arith.constant 0 : i32
    return %arg0, %c0_i32, %c0_i32_0 : i32, i32, i32
  }
}

</mosaic_0001>

<bundles_post_ra>
// kernel: tpu_custom_call.1
= control target key start
LH: loop header
LB: loop body
LE: loop exit
PB: predicated region body
PF: predicated region fallthrough
CT: control target
= control target key end

     0   :  { %9 = vsyncpa [#allocation3], 0  ;;  %s1178_s0 = inlined_call_operand.hbm [shape: f32[9,3,128], index: 0, kind: input, shape index: {}]   ;;  %s1179_s1 = inlined_call_operand.vmem [shape: s32[9,1,128], index: 1, kind: input, shape index: {}]   ;;  %s1180_s2 = inlined_call_operand.vmem [shape: f32[1,3,3], index: 2, kind: input, shape index: {}]   ;;  %s1181_s3 = inlined_call_operand.vmem [shape: f32[1,3,1], index: 3, kind: input, shape index: {}]   ;;  %s1182_s4 = inlined_call_operand.hbm [shape: f32[2,1,128], index: 4, kind: output, shape index: {}]  }
   0x1   :  { %11 = vsyncpa [#allocation3 + $0x1], 0 }
   0x2   :  { %12 = vsyncpa [#allocation4], 0 }
   0x3   :  { %14 = vsyncpa [#allocation4 + $0x1], 0  ;;  %s874_s15 = smov 0   ;;  %s876_s16 = smov 0  }
   0x4   :  { %s878_s17 = smov 0   ;;  %s880_s18 = smov 0  }
   0x5   :  { %s882_s19 = smov 0   ;;  %s884_s20 = smov 0  }
   0x6   :  { %s886_s21 = smov 0   ;;  %s888_s22 = smov 0  }
   0x7   :  { %s890_s23 = smov 0   ;;  %s892_s24 = smov 0  }
   0x8   :  { %s894_s25 = smov 0  }
   0x9 LB: > { %1187 = sst [smem:[#allocation8_spill]] %s831_s23  ;;  %s558_s26 = sadd.s32 4294967295, %s839_s25   ;;  %s839_s25 = sphi %s894_s25, %s20_s25   ;;  %s835_s24 = sphi %s892_s24, %s1199_s24   ;;  %s831_s23 = sphi %s890_s23, %s1198_s23   ;;  %s827_s22 = sphi %s888_s22, %s1197_s22   ;;  %s823_s21 = sphi %s886_s21, %s1196_s21   ;;  %s819_s20 = sphi %s884_s20, %s1205_s20   ;;  %s815_s19 = sphi %s882_s19, %s1204_s19   ;;  %s811_s18 = sphi %s880_s18, %s1203_s18   ;;  %s807_s17 = sphi %s878_s17, %s1202_s17   ;;  %s803_s16 = sphi %s876_s16, %s1201_s16   ;;  %s799_s15 = sphi %s874_s15, %s1200_s15  }
   0xa   : > { %1188 = sst [smem:[#allocation9_spill]] %s835_s24  ;;  %s559_s27 = sadd.s32 4294967294, %s839_s25  }
   0xb   : > { %s29_s28 = sadd.s32 1, %s831_s23  ;;  %s32_s29 = sadd.s32 1, %s835_s24 }
   0xc   : > { %p30_p0 = scmp.ge.s32.totalorder %s29_s28, 3  ;;  %s36_s30 = smul.u32 3, %s835_s24 }
   0xd   : > { %s47_s5 = sadd.s32 1, %s819_s20  ;;  %p54_p1 = scmp.ne.s32.totalorder %s819_s20, %s815_s19 }
   0xe   : > { %s1207_s28 = smov (%p30_p0, %s29_s28), 0  ;;  %s1209_s29 = smov (!%p30_p0, %s32_s29), %s835_s24 }
   0xf   : > { %1189 = sst [smem:[#allocation10_spill]] %s1207_s28  ;;  %s37_s6 = sadd.s32 %s831_s23, %s36_s30 }
  0x10   : > { %p55_p2 = scmp.eq.s32.totalorder %s839_s25, 0  ;;  %p34_p3 = scmp.ge.s32.totalorder %s1209_s29, 2 }
  0x11   : > { %p38_p4 = scmp.lt.s32.totalorder %s37_s6, 4  ;;  %p60_p6 = scmp.ne.s32.totalorder %s815_s19, %s811_s18 }
  0x12   : > { %p942_p5 = por %p55_p2, %p54_p1  ;;  %s1211_s29 = smov (%p34_p3, %s1209_s29), 0 }
  0x13   : > { %1191 = sst [smem:[#allocation11_spill]] %s1211_s29  ;;  %s1213_s6 = smov (!%p38_p4, %s37_s6), 4 }
  0x14   : > { %s40_s8 = smul.u32 3, %s1211_s29  ;;  %p61_p7 = scmp.eq.s32.totalorder %s558_s26, 0 }
  0x15   : > { %s146_s9 = ssub.s32 %s835_s24, %s1211_s29  ;;  %s149_s10 = sadd.s32 1, %s807_s17 }
  0x16   : > { %s41_s11 = sadd.s32 %s40_s8, %s1207_s28  ;;  %p957_p8 = por %p61_p7, %p60_p6 }
  0x17   : > { %p42_p9 = scmp.lt.s32.totalorder %s41_s11, 4  ;;  %p147_p10 = scmp.eq.s32.totalorder %s146_s9, 0 }
  0x18   : > { %p159_p11 = scmp.ne.s32.totalorder %s807_s17, %s803_s16  ;;  %p160_p12 = scmp.eq.s32.totalorder %s558_s26, 5 }
  0x19   : > { %s1215_s11 = smov (!%p42_p9, %s41_s11), 4  ;;  %p165_p1 = scmp.ne.s32.totalorder %s803_s16, %s799_s15 }
  0x1a   : > { %s964_s13 = scalar_select %p147_p10, %s807_s17, %s149_s10  }
  0x1b   : > { %s44_s14 = ssub.s32 %s1213_s6, %s1215_s11  ;;  %p967_p13 = por %p160_p12, %p159_p11 }
  0x1c   : > { %p45_p0 = scmp.eq.s32.totalorder %s44_s14, 0  ;;  %p166_p2 = scmp.eq.s32.totalorder %s559_s27, 5 }
  0x1d   : > { %p561_p4 = scmp.ge.s32.totalorder %s839_s25, 6 }
  0x1e   : > { %s978_s30 = scalar_select %p45_p0, %s819_s20, %s47_s5  }
  0x1f   : > { %p980_p3 = por %p166_p2, %p165_p1  ;;  %188 = sbr.rel (%p561_p4) target bundleno = 73 (0x49), region = 24 }
  0x21   : > { %s1194_s8 = scalar_select %p980_p3, 1, 0 }
  0x26   : > { %191 = sbr.rel (!%p942_p5) target bundleno = 73 (0x49), region = 28  ;;  %s192_s26 = sand.u32 (%p942_p5), 1, %s819_s20  }
  0x27   : > { %s563_s9 = sshll.u32 (%p942_p5), %s1213_s6, 1  ;;  %s562_s10 = sshll.u32 (%p942_p5), %s192_s26, 3 }
  0x28   : > { %s202_s11 = ssub.s32 (%p942_p5), 9, %s563_s9  ;;  %s992_s14 = scalar_lea.sflag (%p942_p5), [#allocation3], %s192_s26 }
  0x29   : > { %p203_p6 = scmp.lt.s32.totalorder (%p942_p5), %s202_s11, 2  ;;  %s196_s29 = scalar_lea.vmem (%p942_p5), [#allocation2], %s562_s10 }
  0x2d   : > { %s1217_s11 = smov (!%p203_p6, %s202_s11), 2 }
  0x2e   : > { %s989_s27 = sshll.u32 %s1217_s11, 6 }
  0x2f   : > { %s207_s5 = ssub.s32 128, %s989_s27 }
  0x30   : > { %208 = vsyncadd %s992_s14, %s207_s5  ;;  %p565_p5 = scmp.ne.s32.totalorder %s989_s27, 0  ;;  %s577_s7 = sshll.u32 %s1213_s6, 7 }
  0x31   : > { %s1000_s9 = scalar_lea.hbm %s1178_s0, %s577_s7  ;;  %s213_s26 = sshll.u32 %s196_s29, 4  ;;  %s1002_s26 = int_to_ptr.vmem [resolvable:$true] %s213_s26 }
  0x32   : > { %s689_s10 = scalar_lea.hbm %s1000_s9, %s989_s27  ;;  %s693_s6 = scalar_lea.hbm %s1178_s0, 576 }
  0x33   : > { %p690_p7 = scmp.ne.s32.totalorder %s1000_s9, %s689_s10  ;;  %p694_p11 = scmp.lt.u32.totalorder %s1000_s9, %s1178_s0 }
  0x34   : > { %p695_p12 = scmp.lt.u32.totalorder %s693_s6, %s689_s10  ;;  %p697_p1 = scmp.lt.u32.totalorder %s689_s10, %s1000_s9 }
  0x35   : > { %p691_p9 = pnand %p690_p7, %p565_p5 }
  0x36   : > { %p696_p0 = por %p695_p12, %p694_p11 }
  0x37   : > { %p692_p10 = pneg %p691_p9 }
  0x38   : > { %p698_p2 = por %p697_p1, %p696_p0 }
  0x3a   : > { %p699_p4 = pnand %p698_p2, %p692_p10 }
  0x3c   : > { %702 = shalt.err (!%p699_p4)
}
  0x3d   : > { %s703_s28 = scalar_lea.vmem %s1002_s26, %s989_s27  ;;  %s841_s29 = smov [#allocation2]  }
  0x3e   : > { %p704_p6 = scmp.ne.s32.totalorder %s1002_s26, %s703_s28  ;;  %s707_s7 = sshll.u32 %s841_s29, 4  ;;  %s708_s7 = int_to_ptr.vmem [resolvable:$false] %s707_s7 }
  0x3f   : > { %s709_s23 = scalar_lea.vmem %s708_s7, 256  ;;  %p710_p3 = scmp.lt.s32.totalorder %s1002_s26, %s708_s7 }
  0x40   : > { %p705_p7 = pnand %p704_p6, %p565_p5  ;;  %p711_p11 = scmp.lt.s32.totalorder %s709_s23, %s703_s28 }
  0x42   : > { %p706_p9 = pneg %p705_p7  ;;  %p712_p12 = por %p711_p11, %p710_p3 }
  0x44   : > { %p713_p0 = pnand %p712_p12, %p706_p9 }
  0x46   : > { %716 = shalt.err (!%p713_p0)
}
  0x47   : > { %s842_s10 = smov 64   ;;  %s843_s11 = smov 4  }
  0x48   : > { %219 = dma.hbm_to_vmem [thread:$0]  (%p565_p5), %s1000_s9, %s989_s27, %s1002_s26, %s992_s14, %s842_s10, %s842_s10, %s843_s11  }
  0x49 PF: > { %p569_p10 = scmp.ge.s32.totalorder %s839_s25, 1  ;;  %p245_p1 = scmp.lt.s32.totalorder %s839_s25, 7 }
  0x4b   : > { %p246_p2 = pnand %p569_p10, %p245_p1 }
  0x4c   : > { %s251_s5 = sand.u32 (!%p246_p2), 1, %s815_s19  }
  0x4d   : > { %249 = sbr.rel (%p246_p2) target bundleno = 288 (0x120), region = 36  ;;  %s1032_s6 = sshll.u32 (!%p246_p2), %s251_s5, 3 }
  0x4e   : > { %s252_s24 = scalar_lea.sflag (!%p246_p2), [#allocation3], %s251_s5  ;;  %s255_s28 = scalar_lea.vmem (!%p246_p2), [#allocation2], %s1032_s6 }
  0x54   : > { %790 = dma.done.wait (%p957_p8), %s252_s24, 128  }
  0x55   : > { %792 = vsyncadd (%p957_p8), %s252_s24, 4294967168  ;;  %s289_s27 = sand.u32 1, %s803_s16   ;;  %s300_s14 = smul.u32 3, %s827_s22 }
  0x56   : > { %s1051_s10 = scalar_lea.vmem [#allocation5], %s289_s27  ;;  %p572_p8 = scmp.ne.s32.totalorder %s823_s21, 0 }
  0x57   : > { %s1042_s9 = sadd.s32 %s823_s21, %s300_s14  ;;  %v844_v0 = vmov (!%p572_p8), 0.0  }
  0x58   : > { %p302_p3 = scmp.lt.s32.totalorder %s1042_s9, 4  ;;  %325 = vst [vmem:[%s1051_s10] sm:$0x1] (!%p572_p8), %v844_v0 }
  0x5a   : > { %s303_s26 = scalar_select %p302_p3, %s1042_s9, 4 }
  0x5b   : > { %324 = sbr.rel (%p572_p8) target bundleno = 98 (0x62), region = 44 }
  0x5c   : > { %s571_s29 = sshll.u32 %s303_s26, 1 }
  0x5d   : > { %p309_p5 = scmp.lt.s32.totalorder %s571_s29, 8 }
  0x5f   : > { %s1219_s29 = smov (!%p309_p5, %s571_s29), 8 }
  0x60   : > { %s311_s12 = scalar_lea.vmem %s1179_s1, %s1219_s29 }
  0x62 PF: > { %v330_v1 = vld [vmem:[%s1180_s2] sm:$0x7]  ;;  %v845_v2 = vmov 0   ;;  %v846_v3 = vmov 2   ;;  %v847_v5 = vmov 1   ;;  %v335_v6 = vlaneseq  ;;  %s573_s21 = sshll.u32 %s1042_s9, 8 }
  0x63   : > { %680 = vset.pattern.permute.xlu0 %v845_v2  ;;  %682 = vset.pattern.permute.xlu1 %v846_v3  ;;  %v331_v4 = vld [vmem:[%s1181_s3] sm:$0x7]  ;;  %v327_v29 = vld [vmem:[%s255_s28 + $0x4] sm:$0x7]  ;;  %vm427_vm12 = vcmask 1042432   ;;  %v337_v55 = vstv %s573_s21  ;;  %vm453_vm15 = vcmask 1040384  }
  0x64   : > { %359 = vperm.xlu0 %680, %v330_v1   ;;  %413 = vperm.xlu1 %682, %v330_v1   ;;  %v1061_v7 = vld [vmem:[%s311_s12] sm:$0x1]  ;;  %v1063_v8 = vld [vmem:[%s311_s12 + $0x1] sm:$0x1]  ;;  %v1066_v9 = vshrl.u32 %v335_v6, 7  ;;  %v336_v58 = vand.u32 127, %v335_v6 }
  0x65   : > { %vm343_vm0 = vcmp.eq.s32.totalorder %v1061_v7, 0  ;;  %vm344_vm1 = vcmp.eq.s32.totalorder %v1063_v8, 0  ;;  %vm371_vm2 = vcmp.eq.s32.totalorder %v1061_v7, 1  ;;  %vm372_vm3 = vcmp.eq.s32.totalorder %v1063_v8, 1  ;;  %v326_v28 = vld [vmem:[%s255_s28] sm:$0x7] }
  0x66   : > { %v349_v10 = vsub.s32 0, %v1066_v9  ;;  %vm398_vm4 = vcmp.eq.s32.totalorder %v1061_v7, 2  ;;  %vm399_vm5 = vcmp.eq.s32.totalorder %v1063_v8, 2  ;;  %v345_v11 = vsel %vm343_vm0, 1, %v845_v2  ;;  %s574_s6 = sshll.u32 %s827_s22, 4  ;;  %s472_s28 = sshll.u32 %s1051_s10, 4  ;;  %s1115_s28 = int_to_ptr.vmem [resolvable:$true] %s472_s28 }
  0x67   : > { %v346_v12 = vsel %vm344_vm1, 1, %v845_v2  ;;  %v373_v13 = vsel %vm371_vm2, 1, %v845_v2  ;;  %v374_v14 = vsel %vm372_vm3, 1, %v845_v2  ;;  %v400_v15 = vsel %vm398_vm4, 1, %v845_v2  ;;  %s1113_s29 = scalar_lea.hbm %s1182_s4, %s574_s6  ;;  %s460_s7 = scalar_lea.sflag [#allocation4], %s289_s27 }
  0x68   : > { %681 = vset.pattern.permute.xlu0 %v847_v5  ;;  %683 = vset.pattern.permute.xlu1 %v845_v2  ;;  %v401_v16 = vsel %vm399_vm5, 1, %v845_v2  ;;  %v350_v17 = vrot.slane %v345_v11, %v349_v10  ;;  %v354_v18 = vrot.slane %v346_v12, %v349_v10  ;;  %v378_v19 = vrot.slane %v373_v13, %v349_v10  ;;  %s717_s23 = scalar_lea.vmem %s1115_s28, 16  ;;  %s848_s22 = smov [#allocation5]  }
  0x69   : > { %386 = vperm.xlu0 %681, %v330_v1   ;;  %366 = vperm.xlu1 %683, %v331_v4   ;;  %v382_v20 = vrot.slane %v374_v14, %v349_v10  ;;  %v405_v22 = vrot.slane %v400_v15, %v349_v10  ;;  %v409_v23 = vrot.slane %v401_v16, %v349_v10  ;;  %v393_v52 = vsub.s32 1, %v1066_v9  ;;  %v452_v14 = vld [vmem:[%s1051_s10] sm:$0x1]  ;;  %p718_p4 = scmp.ne.s32.totalorder %s1115_s28, %s717_s23  ;;  %s721_s12 = sshll.u32 %s848_s22, 4  ;;  %s722_s12 = int_to_ptr.vmem [resolvable:$false] %s721_s12 }
  0x6a   : > { %vm355_vm6 = vcmp.eq.s32.totalorder %v350_v17, 1  ;;  %vm356_vm7 = vcmp.eq.s32.totalorder %v354_v18, 1  ;;  %vm383_vm8 = vcmp.eq.s32.totalorder %v378_v19, 1  ;;  %v420_v54 = vsub.s32 2, %v1066_v9  ;;  %s723_s11 = scalar_lea.vmem %s722_s12, 32  ;;  %p724_p9 = scmp.lt.s32.totalorder %s1115_s28, %s722_s12 }
  0x6b   : > { %vm384_vm9 = vcmp.eq.s32.totalorder %v382_v20, 1  ;;  %vm410_vm10 = vcmp.eq.s32.totalorder %v405_v22, 1  ;;  %vm411_vm11 = vcmp.eq.s32.totalorder %v409_v23, 1  ;;  %v338_v60 = vadd.s32 128, %v337_v55  ;;  %p719_p6 = pnand %p718_p4, %p967_p13  ;;  %p725_p11 = scmp.lt.s32.totalorder %s723_s11, %s717_s23 }
  0x6c   : > { %v339_v0 = vadd.s32 %v337_v55, %v336_v58 }
  0x6d   : > { %684 = vset.pattern.permute.xlu0 %v846_v3  ;;  %v340_v1 = vadd.s32 %v338_v60, %v336_v58  ;;  %p720_p7 = pneg %p719_p6  ;;  %p726_p12 = por %p725_p11, %p724_p9 }
  0x6e   : > { %vm341_vm13 = vcmp.lt.s32.totalorder %v339_v0, 1100 }
  0x6f   : > { %vm342_vm14 = vcmp.lt.s32.totalorder %v340_v1, 1100  ;;  %p727_p0 = pnand %p726_p12, %p720_p7 }
  0xe3   : > { %v360_v21 = vpop.permute.xlu0 %359  ;;  %v414_v24 = vpop.permute.xlu1 %413 }
  0xe4   : > { %v362_v25 = vsel %vm355_vm6, %v360_v21, 0.0  ;;  %v363_v26 = vsel %vm356_vm7, %v360_v21, 0.0 }
  0xe8   : > { %v387_v27 = vpop.permute.xlu0 %386  ;;  %v367_v53 = vpop.permute.xlu1 %366 }
  0xe9   : > { %v389_v30 = vsel %vm383_vm8, %v387_v27, %v362_v25  ;;  %v390_v31 = vsel %vm384_vm9, %v387_v27, %v363_v26  ;;  %v394_v56 = vrot.slane %v367_v53, %v393_v52  ;;  %v369_v57 = vsel %vm343_vm0, %v367_v53, 0.0 }
  0xea   : > { %v416_v32 = vsel %vm410_vm10, %v414_v24, %v389_v30  ;;  %v417_v33 = vsel %vm411_vm11, %v414_v24, %v390_v31  ;;  %v370_v59 = vsel %vm344_vm1, %v367_v53, 0.0  ;;  %v421_v61 = vrot.slane %v367_v53, %v420_v54 }
  0xeb   : > { %v425_v34 = vmul.f32 %v416_v32, %v326_v28  ;;  %v426_v35 = vmul.f32 %v417_v33, %v327_v29  ;;  %v396_v62 = vsel %vm371_vm2, %v394_v56, %v369_v57  ;;  %v397_v63 = vsel %vm372_vm3, %v394_v56, %v370_v59 }
  0xec   : > { %v423_v3 = vsel %vm398_vm4, %v421_v61, %v396_v62  ;;  %v424_v5 = vsel %vm399_vm5, %v421_v61, %v397_v63 }
  0xed   : > { %v428_v36 = vsel %vm427_vm12, %v425_v34, 0.0  ;;  %v435_v37 = vsel %vm427_vm12, %v426_v35, 0.0 }
  0xee   : > { %v429_v38 = vrot.slane %v428_v36, 4  ;;  %v436_v39 = vrot.slane %v435_v37, 4 }
  0xf0   : > { %v430_v40 = vadd.f32 %v429_v38, %v428_v36  ;;  %v437_v41 = vadd.f32 %v436_v39, %v435_v37 }
  0xf2   : > { %v431_v42 = vrot.slane %v430_v40, 2  ;;  %v438_v43 = vrot.slane %v437_v41, 2 }
  0xf4   : > { %v432_v44 = vadd.f32 %v431_v42, %v430_v40  ;;  %v439_v45 = vadd.f32 %v438_v43, %v437_v41 }
  0xf6   : > { %v433_v46 = vrot.slane %v432_v44, 1  ;;  %v440_v47 = vrot.slane %v439_v45, 1 }
  0xf8   : > { %v434_v48 = vadd.f32 %v433_v46, %v432_v44  ;;  %v441_v49 = vadd.f32 %v440_v47, %v439_v45 }
  0xfa   : > { %v442_v50 = vadd.f32 1e-08, %v434_v48  ;;  %v443_v51 = vadd.f32 1e-08, %v441_v49 }
  0xfc   : > { %685 = vlog2.f32 %v442_v50 }
  0xfd   : > { %687 = vlog2.f32 %v443_v51 }
 0x106   : > { %v686_v2 = vpop.eup %685 }
 0x107   : > { %v688_v4 = vpop.eup %687  ;;  %v445_v6 = vmul.f32 0.6931472, %v686_v2 }
 0x108   : > { %v447_v9 = vmul.f32 0.6931472, %v688_v4 }
 0x109   : > { %v448_v10 = vmul.f32 %v445_v6, %v423_v3 }
 0x10a   : > { %v449_v11 = vmul.f32 %v447_v9, %v424_v5 }
 0x10b   : > { %v450_v12 = vsel %vm341_vm13, %v448_v10, 0.0 }
 0x10c   : > { %v451_v13 = vsel %vm342_vm14, %v449_v11, 0.0  ;;  %v454_v7 = vsel %vm453_vm15, %v450_v12, 0.0 }
 0x10d   : > { %v455_v15 = vsel %vm453_vm15, %v451_v13, 0.0 }
 0x10e   : > { %v456_v16 = vadd.f32 %v455_v15, %v454_v7 }
 0x110   : > { %v457_v8 = vadd.f32 %v456_v16, %v452_v14 }
 0x112   : > { %458 = vst [vmem:[%s1051_s10] sm:$0x1] %v457_v8 }
 0x113   : > { %730 = shalt.err (!%p727_p0)
}
 0x114   : > { %s731_s27 = scalar_lea.hbm %s1113_s29, 16  ;;  %s735_s24 = scalar_lea.hbm %s1182_s4, 32 }
 0x115   : > { %p732_p10 = scmp.ne.s32.totalorder %s1113_s29, %s731_s27  ;;  %p736_p3 = scmp.lt.u32.totalorder %s1113_s29, %s1182_s4 }
 0x116   : > { %p737_p5 = scmp.lt.u32.totalorder %s735_s24, %s731_s27  ;;  %p739_p4 = scmp.lt.u32.totalorder %s731_s27, %s1113_s29 }
 0x117   : > { %p733_p1 = pnand %p732_p10, %p967_p13 }
 0x118   : > { %p738_p8 = por %p737_p5, %p736_p3 }
 0x119   : > { %p734_p2 = pneg %p733_p1 }
 0x11a   : > { %p740_p6 = por %p739_p4, %p738_p8 }
 0x11c   : > { %p741_p7 = pnand %p740_p6, %p734_p2 }
 0x11e   : > { %744 = shalt.err (!%p741_p7)
}
 0x11f   : > { %579 = dma.vmem_to_hbm [thread:$0]  (%p967_p13), %s1115_s28, 16, %s1113_s29, %s460_s7  }
 0x120 PF: > { %p585_p9 = scmp.ge.s32.totalorder %s839_s25, 2  ;;  %s484_s6 = sand.u32 1, %s799_s15  }
 0x121   : > { %p1195_p11 = scmp.ne.s32.totalorder %s1194_s8, 0  ;;  %s485_s9 = scalar_lea.sflag [#allocation4], %s484_s6 }
 0x123   : > { %p582_p12 = pnand %p585_p9, %p1195_p11 }
 0x125   : > { %794 = dma.done.wait (!%p582_p12), %s485_s9, 16  }
 0x126   : > { %796 = vsyncadd (!%p582_p12), %s485_s9, 4294967280  ;;  %s20_s25 = sadd.s32 1, %s839_s25   ;;  %s1196_s21 = sld [smem:[#allocation8_spill]] }
 0x127   : > { %p17_p0 = scmp.ge.s32.totalorder %s20_s25, 8   ;;  %s1197_s22 = sld [smem:[#allocation9_spill]] }
 0x128   : > { %s1198_s23 = sld [smem:[#allocation10_spill]]  ;;  %s1199_s24 = sld [smem:[#allocation11_spill]] }
 0x129   : > { %s1200_s15 = smov %s803_s16  ;;  %s1201_s16 = smov %s807_s17 }
 0x12a   : > { %s1202_s17 = smov %s964_s13  ;;  %s1203_s18 = smov %s815_s19 }
 0x12b   : > { %s1204_s19 = smov %s819_s20  ;;  %s1205_s20 = smov %s978_s30 }
 0x12c   :  { %19 = sbr.rel (!%p17_p0) target bundleno = 9 (0x9), region = 88 }
 0x133   :  { %489 = vsyncpa [#allocation3], 1 }
 0x134   :  { %491 = vsyncpa [#allocation3 + $0x1], 1 }
 0x135   :  { %492 = vsyncpa [#allocation4], 1 }
 0x136   :  { %494 = vsyncpa [#allocation4 + $0x1], 1 }

</bundles_post_ra>
